<compile_context>
chip_gen: v7x
topology: tpu7x:2x2x1
jax: 0.10.0
libtpu: 0.0.40
codegen_flags: <defaults>
</compile_context>

<pallas_src>
import jax
import jax.numpy as jnp
from jax.experimental import pallas as pl
from jax.experimental.pallas import tpu as pltpu


def mlp_kernel(x_ref, w1b1_ref, w2b2_ref, w3b3_ref, o_ref):
    """Fused 3-layer MLP on one batch tile.

    x_ref    : (bt, d_in)      natural row-major input tile (f32 or bf16)
    w1b1_ref : (d1, d_in + 1)  [W1 | b1], f32
    w2b2_ref : (d2, d1  + 1)   [W2 | b2], f32 or bf16
    w3b3_ref : (d_out, d2 + 1) [W3 | b3], f32
    o_ref    : (d_out, bt)     lane-dense output tile (f32)
    """
    d_in = x_ref.shape[1]
    d1 = w1b1_ref.shape[0]
    d2 = w2b2_ref.shape[0]

    # Upcast the (possibly bf16) activation tile once; all VPU math stays f32.
    x32 = x_ref[...].astype(jnp.float32)                      # (bt, d_in)

    # ---- Layer 1: contract the tiny d_in axis of BOTH operands. This both does
    #      the Linear and lands the result feature-major (d1, bt) with batch on
    #      the 128-lane axis, so no explicit transpose of x is ever needed.
    w1 = w1b1_ref[:, :d_in].astype(jnp.float32)               # (d1, d_in)
    b1 = w1b1_ref[:, d_in:].astype(jnp.float32)               # (d1, 1)
    h1 = jax.lax.dot_general(
        w1, x32, dimension_numbers=(((1,), (1,)), ((), ())),
        preferred_element_type=jnp.float32)                   # (d1, bt)
    h1 = jnp.maximum(h1 + b1, 0.0)

    # ---- Layer 2: the main matmul; batch occupies the MXU's wide axis.
    w2 = w2b2_ref[:, :d1]                                     # (d2, d1) f32/bf16
    b2 = w2b2_ref[:, d1:].astype(jnp.float32)                 # (d2, 1)
    h2 = jnp.dot(w2, h1.astype(w2.dtype),
                 preferred_element_type=jnp.float32)          # (d2, bt) f32
    h2 = jnp.maximum(h2 + b2, 0.0)

    # ---- Layer 3: (d_out, d2) @ (d2, bt); MXU is idle otherwise, so use it.
    w3 = w3b3_ref[:, :d2].astype(jnp.float32)                 # (d_out, d2)
    b3 = w3b3_ref[:, d2:].astype(jnp.float32)                 # (d_out, 1)
    out = jnp.dot(w3, h2, preferred_element_type=jnp.float32) + b3
    o_ref[...] = out.astype(o_ref.dtype)


def neural_network_forward(x, params, *, batch_tile=4096, use_bf16=True,
                           megacore=False):
    """Forward pass matching nn.Sequential(Linear, ReLU, Linear, ReLU, Linear).

    x        : [B, input_size], f32 or bf16 (pass bf16 to halve the x HBM stream;
               it is upcast in-kernel, so this is safe on v5e as well).
    params   : ((w1,b1),(w2,b2),(w3,b3)) with Wi in PyTorch (out, in) layout, bi (out,)
    megacore : set True on v7x (2 TensorCores) to keep >= 2 large parallel grid
               steps; on single-TC v5e/v6e the extra step is pure overhead.
    Returns  : [B, d_out] float32
    """
    (w1, b1), (w2, b2), (w3, b3) = params
    B, d_in = x.shape
    d1, d2, d_out = w1.shape[0], w2.shape[0], w3.shape[0]

    # ---- consolidate each layer's weight + bias into one resident [W | b] array
    w1b1 = jnp.concatenate([w1, b1[:, None]], axis=1).astype(jnp.float32)
    w2_dt = jnp.bfloat16 if use_bf16 else jnp.float32
    w2b2 = jnp.concatenate([w2, b2[:, None]], axis=1).astype(w2_dt)
    w3b3 = jnp.concatenate([w3, b3[:, None]], axis=1).astype(jnp.float32)

    # ---- lane-dense batch tiling: as few, as fat grid steps as possible --------
    bt = max(128, (int(batch_tile) // 128) * 128)
    cover = 128 * pl.cdiv(B, 128)          # smallest 128-multiple covering B
    bt = min(bt, cover)                    # don't over-allocate for small batches
    if megacore and cover > 128:
        # v7x only: >= 2 large steps so the batch axis shards across the 2 TCs.
        bt = min(bt, 128 * pl.cdiv(pl.cdiv(B, 2), 128))
    n_steps = pl.cdiv(B, bt)               # ragged tail = partial last block

    out = pl.pallas_call(
        mlp_kernel,
        out_shape=jax.ShapeDtypeStruct((d_out, B), jnp.float32),
        grid=(n_steps,),
        in_specs=[
            # x tile: contiguous HBM DMA of (bt, d_in); no wrapper transpose/pad.
            pl.BlockSpec((bt, d_in), lambda i: (i, 0)),
            # tiny packed weights: full-array blocks, resident across grid steps.
            pl.BlockSpec((d1, d_in + 1), lambda i: (0, 0)),
            pl.BlockSpec((d2, d1 + 1), lambda i: (0, 0)),
            pl.BlockSpec((d_out, d2 + 1), lambda i: (0, 0)),
        ],
        # lane-dense output block (batch on the 128-lane axis -> unmasked stores)
        out_specs=pl.BlockSpec((d_out, bt), lambda i: (0, i)),
        compiler_params=pltpu.CompilerParams(
            dimension_semantics=("parallel",)),
    )(x, w1b1, w2b2, w3b3)

    if d_out == 1:
        # (1, B) -> (B, 1) is a pure reshape (same contiguous data), not a transpose.
        return out.reshape(B, 1)
    return out.T


def init_params(key, input_size=3, hidden_unit_list=(20, 30, 1),
                a_beta=2.0, b_beta=1.0):
    """Deterministic replication of the module's __init__ (PyTorch layouts)."""
    key, k_sigma = jax.random.split(key)
    # sigma_beta^2 ~ InverseGamma(a_beta, b_beta) == b_beta / Gamma(a_beta, 1)
    gamma_sample = jax.random.gamma(k_sigma, a_beta, shape=())
    sigma_beta = jnp.sqrt(b_beta / gamma_sample)

    params = []
    cur = input_size
    for units in hidden_unit_list:
        key, kw, kb = jax.random.split(key, 3)
        w = sigma_beta * jax.random.normal(kw, (units, cur), dtype=jnp.float32)
        b = sigma_beta * jax.random.normal(kb, (units,), dtype=jnp.float32)
        params.append((w, b))
        cur = units
    return params


def reference_forward(x, params):
    """Pure-JAX reference: x @ W.T + b with ReLU between layers (f32-exact dots)."""
    h = x.astype(jnp.float32)
    n = len(params)
    for i, (w, b) in enumerate(params):
        h = jnp.dot(h, w.T, precision=jax.lax.Precision.HIGHEST) + b
        if i < n - 1:
            h = jnp.maximum(h, 0.0)
    return h


if __name__ == "__main__":
    key = jax.random.PRNGKey(0)
    k_params, k_x = jax.random.split(key)

    input_size = 3
    hidden_unit_list = (20, 30, 1)
    batch = 512  # small; one fat 512-lane grid step by default

    params = init_params(k_params, input_size, hidden_unit_list,
                         a_beta=2.0, b_beta=1.0)
    x = jax.random.normal(k_x, (batch, input_size), dtype=jnp.float32)

    ref = reference_forward(x, params)
    scale = float(jnp.max(jnp.abs(ref))) + 1e-6

    # f32 path (single grid step, natural-layout x, lane-dense output)
    out = jax.block_until_ready(
        neural_network_forward(x, params, use_bf16=False))
    assert out.shape == (batch, hidden_unit_list[-1])
    assert float(jnp.max(jnp.abs(out - ref))) <= 5e-3 * scale, "f32 mismatch"

    # ragged batch: partial last block, no wrapper-side padding
    out_small = jax.block_until_ready(
        neural_network_forward(x[:37], params, use_bf16=False))
    assert out_small.shape == (37, hidden_unit_list[-1])
    assert float(jnp.max(jnp.abs(out_small - ref[:37]))) <= 5e-3 * scale, \
        "ragged mismatch"

    # v7x-style megacore split (2 parallel steps); still correct on 1-TC chips
    out_mc = jax.block_until_ready(
        neural_network_forward(x, params, use_bf16=False, megacore=True))
    assert float(jnp.max(jnp.abs(out_mc - ref))) <= 5e-3 * scale, \
        "megacore-split mismatch"

    # bf16 activation stream (caller-supplied bf16 x) + bf16 layer-2 weights
    out_bf16 = jax.block_until_ready(
        neural_network_forward(x.astype(jnp.bfloat16), params, use_bf16=True))
    assert out_bf16.shape == (batch, hidden_unit_list[-1])
    assert float(jnp.max(jnp.abs(out_bf16 - ref))) <= 5e-2 * scale, \
        "bf16 path drifted too far from f32 reference"

    print("KERNEL_OK")
</pallas_src>

<mosaic_0001>
module attributes {stable_mosaic.version = 11 : i64} {
  func.func @mlp_kernel(%arg0: i32, %arg1: memref<512x3xf32, #tpu.memory_space<vmem>>, %arg2: memref<20x4xf32, #tpu.memory_space<vmem>>, %arg3: memref<30x21xf32, #tpu.memory_space<vmem>>, %arg4: memref<1x31xf32, #tpu.memory_space<vmem>>, %arg5: memref<1x512xf32, #tpu.memory_space<vmem>>) attributes {dimension_semantics = [#tpu.dimension_semantics<parallel>], iteration_bounds = array<i64: 1>, scalar_prefetch = 0 : i64, scratch_operands = 0 : i64, tpu.core_type = #tpu.core_type<tc>, window_params = [{transform_indices = @transform_0, window_bounds = array<i64: 512, 3>}, {pipeline_mode = #tpu.pipeline_mode<synchronous>, transform_indices = @transform_1, window_bounds = array<i64: 20, 4>}, {pipeline_mode = #tpu.pipeline_mode<synchronous>, transform_indices = @transform_2, window_bounds = array<i64: 30, 21>}, {pipeline_mode = #tpu.pipeline_mode<synchronous>, transform_indices = @transform_3, window_bounds = array<i64: 1, 31>}, {transform_indices = @transform_4, window_bounds = array<i64: 1, 512>}]} {
    %c0 = arith.constant 0 : index
    %c0_0 = arith.constant 0 : index
    %0 = vector.load %arg1[%c0, %c0_0] : memref<512x3xf32, #tpu.memory_space<vmem>>, vector<512x3xf32>
    %c0_1 = arith.constant 0 : index
    %c0_2 = arith.constant 0 : index
    %1 = vector.load %arg2[%c0_1, %c0_2] : memref<20x4xf32, #tpu.memory_space<vmem>>, vector<20x3xf32>
    %c0_3 = arith.constant 0 : index
    %c3 = arith.constant 3 : index
    %2 = vector.load %arg2[%c0_3, %c3] : memref<20x4xf32, #tpu.memory_space<vmem>>, vector<20x1xf32>
    %cst = arith.constant dense<0.000000e+00> : vector<20x512xf32>
    %3 = tpu.matmul %1, %0, %cst {dimension_numbers = #tpu.dot_dimension_numbers<[1], [1], [0], [0], [0, 0, 1, 0], [], []>} : vector<20x3xf32>, vector<512x3xf32>, vector<20x512xf32> -> vector<20x512xf32>
    %4 = vector.broadcast %2 : vector<20x1xf32> to vector<20x512xf32>
    %5 = arith.addf %3, %4 : vector<20x512xf32>
    %cst_4 = arith.constant 0.000000e+00 : f32
    %6 = vector.broadcast %cst_4 : f32 to vector<20x512xf32>
    %7 = arith.maximumf %5, %6 : vector<20x512xf32>
    %c0_5 = arith.constant 0 : index
    %c0_6 = arith.constant 0 : index
    %8 = vector.load %arg3[%c0_5, %c0_6] : memref<30x21xf32, #tpu.memory_space<vmem>>, vector<30x20xf32>
    %c0_7 = arith.constant 0 : index
    %c20 = arith.constant 20 : index
    %9 = vector.load %arg3[%c0_7, %c20] : memref<30x21xf32, #tpu.memory_space<vmem>>, vector<30x1xf32>
    %cst_8 = arith.constant dense<0.000000e+00> : vector<30x512xf32>
    %10 = tpu.matmul %8, %7, %cst_8 {dimension_numbers = #tpu.dot_dimension_numbers<[1], [0], [0], [1], [0, 0, 1, 1], [], []>} : vector<30x20xf32>, vector<20x512xf32>, vector<30x512xf32> -> vector<30x512xf32>
    %11 = vector.broadcast %9 : vector<30x1xf32> to vector<30x512xf32>
    %12 = arith.addf %10, %11 : vector<30x512xf32>
    %cst_9 = arith.constant 0.000000e+00 : f32
    %13 = vector.broadcast %cst_9 : f32 to vector<30x512xf32>
    %14 = arith.maximumf %12, %13 : vector<30x512xf32>
    %c0_10 = arith.constant 0 : index
    %c0_11 = arith.constant 0 : index
    %15 = vector.load %arg4[%c0_10, %c0_11] : memref<1x31xf32, #tpu.memory_space<vmem>>, vector<1x30xf32>
    %c0_12 = arith.constant 0 : index
    %c30 = arith.constant 30 : index
    %16 = vector.load %arg4[%c0_12, %c30] : memref<1x31xf32, #tpu.memory_space<vmem>>, vector<1x1xf32>
    %cst_13 = arith.constant dense<0.000000e+00> : vector<1x512xf32>
    %17 = tpu.matmul %15, %14, %cst_13 {dimension_numbers = #tpu.dot_dimension_numbers<[1], [0], [0], [1], [0, 0, 1, 1], [], []>} : vector<1x30xf32>, vector<30x512xf32>, vector<1x512xf32> -> vector<1x512xf32>
    %18 = vector.broadcast %16 : vector<1x1xf32> to vector<1x512xf32>
    %19 = arith.addf %17, %18 : vector<1x512xf32>
    %c0_14 = arith.constant 0 : index
    %c0_15 = arith.constant 0 : index
    %20 = vector.load %arg5[%c0_14, %c0_15] : memref<1x512xf32, #tpu.memory_space<vmem>>, vector<1x512xf32>
    tpu.vector_store %arg5[%c0_14, %c0_15], %19 {strides = array<i32>} : memref<1x512xf32, #tpu.memory_space<vmem>>, vector<1x512xf32>,
    return
  }
  func.func @transform_0(%arg0: i32) -> (i32, i32) {
    %c0_i32 = arith.constant 0 : i32
    %c0_i32_0 = arith.constant 0 : i32
    return %arg0, %c0_i32 : i32, i32
  }
  func.func @transform_1(%arg0: i32) -> (i32, i32) {
    %c0_i32 = arith.constant 0 : i32
    %c0_i32_0 = arith.constant 0 : i32
    %c0_i32_1 = arith.constant 0 : i32
    return %c0_i32, %c0_i32_0 : i32, i32
  }
  func.func @transform_2(%arg0: i32) -> (i32, i32) {
    %c0_i32 = arith.constant 0 : i32
    %c0_i32_0 = arith.constant 0 : i32
    %c0_i32_1 = arith.constant 0 : i32
    return %c0_i32, %c0_i32_0 : i32, i32
  }
  func.func @transform_3(%arg0: i32) -> (i32, i32) {
    %c0_i32 = arith.constant 0 : i32
    %c0_i32_0 = arith.constant 0 : i32
    %c0_i32_1 = arith.constant 0 : i32
    return %c0_i32, %c0_i32_0 : i32, i32
  }
  func.func @transform_4(%arg0: i32) -> (i32, i32) {
    %c0_i32 = arith.constant 0 : i32
    %c0_i32_0 = arith.constant 0 : i32
    return %c0_i32, %arg0 : i32, i32
  }
}

</mosaic_0001>

<bundles_post_ra>
// kernel: tpu_custom_call.1
= control target key start
LH: loop header
LB: loop body
LE: loop exit
PB: predicated region body
PF: predicated region fallthrough
CT: control target
= control target key end

     0   :  { %vm100_vm0 = vcmask 23552   ;;  %v1257_v7 = vmov 3   ;;  %s1663_s0 = inlined_call_operand.vmem [shape: f32[512,3], index: 0, kind: input, shape index: {}]   ;;  %s1664_s1 = inlined_call_operand.vmem [shape: f32[20,4], index: 1, kind: input, shape index: {}]   ;;  %s1665_s2 = inlined_call_operand.vmem [shape: f32[30,21], index: 2, kind: input, shape index: {}]   ;;  %s1666_s3 = inlined_call_operand.vmem [shape: f32[1,31], index: 3, kind: input, shape index: {}]   ;;  %s1667_s4 = inlined_call_operand.hbm [shape: f32[1,512], index: 4, kind: output, shape index: {}]  }
   0x1   :  { %v34_v0 = vld [vmem:[%s1663_s0 + $0x80] sm:$0xff]  ;;  %v35_v1 = vld [vmem:[%s1663_s0 + $0x88] sm:$0xff]  ;;  %vm1300_vm1 = vmpackc.low %vm100_vm0, %vm100_vm0  ;;  %1228 = vset.pattern.permute.xlu0 %v1257_v7  ;;  %1229 = vset.pattern.permute.xlu1 %v1257_v7 }
   0x2   :  { %v66_v2 = vld [vmem:[%s1663_s0 + $0x180] sm:$0xff]  ;;  %v1097_v3 = vpack.c.bf16 %v35_v1, %v34_v0  ;;  %v67_v5 = vld [vmem:[%s1663_s0 + $0x188] sm:$0xff]  ;;  %v36_v14 = vld [vmem:[%s1663_s0 + $0x90] sm:$0xff] }
   0x3   :  { %v18_v6 = vld [vmem:[%s1663_s0] sm:$0xff]  ;;  %v1145_v8 = vpack.c.bf16 %v67_v5, %v66_v2  ;;  %v19_v9 = vld [vmem:[%s1663_s0 + $0x8] sm:$0xff]  ;;  %v37_v15 = vld [vmem:[%s1663_s0 + $0x98] sm:$0xff] }
   0x4   :  { %v50_v10 = vld [vmem:[%s1663_s0 + $0x100] sm:$0xff]  ;;  %v51_v11 = vld [vmem:[%s1663_s0 + $0x108] sm:$0xff]  ;;  %1099 = vmatprep.subr.msk.bf16.mxu0 %vm1300_vm1, %v1097_v3  ;;  %v1100_v12 = vpack.c.bf16 %v19_v9, %v18_v6  ;;  %v68_v16 = vld [vmem:[%s1663_s0 + $0x190] sm:$0xff]  ;;  %v1103_v17 = vpack.c.bf16 %v37_v15, %v36_v14 }
   0x5   :  { %v1148_v13 = vpack.c.bf16 %v51_v11, %v50_v10  ;;  %1147 = vmatprep.subr.msk.bf16.mxu1 %vm1300_vm1, %v1145_v8  ;;  %v69_v18 = vld [vmem:[%s1663_s0 + $0x198] sm:$0xff]  ;;  %v20_v20 = vld [vmem:[%s1663_s0 + $0x10] sm:$0xff]  ;;  %v38_v24 = vld [vmem:[%s1663_s0 + $0xa0] sm:$0xff] }
   0x6   :  { %1102 = vmatpush3.bf16.xpose.msk.msra.mxu0 %vm1300_vm1, %v1100_v12  ;;  %v1151_v19 = vpack.c.bf16 %v69_v18, %v68_v16  ;;  %v21_v21 = vld [vmem:[%s1663_s0 + $0x18] sm:$0xff]  ;;  %v52_v22 = vld [vmem:[%s1663_s0 + $0x110] sm:$0xff]  ;;  %v39_v25 = vld [vmem:[%s1663_s0 + $0xa8] sm:$0xff] }
   0x7   :  { %1150 = vmatpush3.bf16.xpose.msk.msra.mxu1 %vm1300_vm1, %v1148_v13  ;;  %1105 = vmatprep.subr.msk.bf16.mxu0 %vm1300_vm1, %v1103_v17  ;;  %v53_v23 = vld [vmem:[%s1663_s0 + $0x118] sm:$0xff]  ;;  %v70_v26 = vld [vmem:[%s1663_s0 + $0x1a0] sm:$0xff]  ;;  %v71_v27 = vld [vmem:[%s1663_s0 + $0x1a8] sm:$0xff]  ;;  %v1106_v28 = vpack.c.bf16 %v21_v21, %v20_v20  ;;  %v1109_v30 = vpack.c.bf16 %v39_v25, %v38_v24 }
   0x8   :  { %1153 = vmatprep.subr.msk.bf16.mxu1 %vm1300_vm1, %v1151_v19  ;;  %v1154_v29 = vpack.c.bf16 %v53_v23, %v52_v22  ;;  %v1157_v31 = vpack.c.bf16 %v71_v27, %v70_v26  ;;  %v22_v32 = vld [vmem:[%s1663_s0 + $0x20] sm:$0xff]  ;;  %v23_v33 = vld [vmem:[%s1663_s0 + $0x28] sm:$0xff]  ;;  %v40_v36 = vld [vmem:[%s1663_s0 + $0xb0] sm:$0xff] }
   0x9   :  { %v54_v34 = vld [vmem:[%s1663_s0 + $0x120] sm:$0xff]  ;;  %v55_v35 = vld [vmem:[%s1663_s0 + $0x128] sm:$0xff]  ;;  %v41_v37 = vld [vmem:[%s1663_s0 + $0xb8] sm:$0xff]  ;;  %v1112_v40 = vpack.c.bf16 %v23_v33, %v22_v32 }
   0xa   :  { %v72_v38 = vld [vmem:[%s1663_s0 + $0x1b0] sm:$0xff]  ;;  %v73_v39 = vld [vmem:[%s1663_s0 + $0x1b8] sm:$0xff]  ;;  %v1160_v41 = vpack.c.bf16 %v55_v35, %v54_v34  ;;  %v1115_v42 = vpack.c.bf16 %v41_v37, %v40_v36  ;;  %v1418_v48 = vld [vmem:[%s1664_s1] sm:$0xff] }
   0xb   :  { %v1163_v43 = vpack.c.bf16 %v73_v39, %v72_v38  ;;  %v24_v44 = vld [vmem:[%s1663_s0 + $0x30] sm:$0xff]  ;;  %v25_v45 = vld [vmem:[%s1663_s0 + $0x38] sm:$0xff]  ;;  %v42_v49 = vld [vmem:[%s1663_s0 + $0xc0] sm:$0xff] }
   0xc   :  { %v56_v46 = vld [vmem:[%s1663_s0 + $0x130] sm:$0xff]  ;;  %v57_v47 = vld [vmem:[%s1663_s0 + $0x138] sm:$0xff]  ;;  %v43_v50 = vld [vmem:[%s1663_s0 + $0xc8] sm:$0xff] }
   0xe   :  { %1108 = vmatpush3.bf16.xpose.msk.msra.mxu0 %vm1300_vm1, %v1106_v28 }
   0xf   :  { %1156 = vmatpush3.bf16.xpose.msk.msra.mxu1 %vm1300_vm1, %v1154_v29  ;;  %1111 = vmatprep.subr.msk.bf16.mxu0 %vm1300_vm1, %v1109_v30 }
  0x10   :  { %1159 = vmatprep.subr.msk.bf16.mxu1 %vm1300_vm1, %v1157_v31 }
  0x16   :  { %1114 = vmatpush3.bf16.xpose.msk.msra.mxu0 %vm1300_vm1, %v1112_v40 }
  0x17   :  { %1162 = vmatpush3.bf16.xpose.msk.msra.mxu1 %vm1300_vm1, %v1160_v41  ;;  %1117 = vmatprep.subr.msk.bf16.mxu0 %vm1300_vm1, %v1115_v42 }
  0x18   :  { %1165 = vmatprep.subr.msk.bf16.mxu1 %vm1300_vm1, %v1163_v43 }
  0x19   :  { %9 = vsyncpa [#allocation3], 0  ;;  %v74_v51 = vld [vmem:[%s1663_s0 + $0x1c0] sm:$0xff]  ;;  %v75_v52 = vld [vmem:[%s1663_s0 + $0x1c8] sm:$0xff]  ;;  %1053 = vmatprep.mubr.msk.f32.mxu0 %vm100_vm0, %v1418_v48  ;;  %1091 = vmatprep.mubr.msk.f32.mxu1 %vm100_vm0, %v1418_v48  ;;  %v1118_v54 = vpack.c.bf16 %v25_v45, %v24_v44  ;;  %v1166_v55 = vpack.c.bf16 %v57_v47, %v56_v46  ;;  %v1121_v56 = vpack.c.bf16 %v43_v50, %v42_v49  ;;  %v1258_v4 = vmov 0.0  }
  0x1a   :  { %v1443_v53 = vld [vmem:[%s1664_s1 + $0x10] sm:$0xf]  ;;  %87 = vperm.xlu0 %1228, %v1418_v48   ;;  %v1169_v57 = vpack.c.bf16 %v75_v52, %v74_v51  ;;  %v1450_v58 = vld [vmem:[%s1664_s1 + $0x8] sm:$0xff]  ;;  %v26_v59 = vld [vmem:[%s1663_s0 + $0x40] sm:$0xff]  ;;  %v1259_v40 = vmov 20   ;;  %vm510_vm2 = vcmask 1043456  }
  0x1b   :  { %97 = vperm.xlu1 %1229, %v1443_v53   ;;  %v27_v60 = vld [vmem:[%s1663_s0 + $0x48] sm:$0xff]  ;;  %v58_v61 = vld [vmem:[%s1663_s0 + $0x140] sm:$0xff]  ;;  %v44_v63 = vld [vmem:[%s1663_s0 + $0xd0] sm:$0xff]  ;;  %vm501_vm3 = vcmask 162816   ;;  %vm730_vm4 = vcmask 1045504   ;;  %vm1261_vm5 = vmmov 1  }
  0x1c   :  { %v59_v62 = vld [vmem:[%s1663_s0 + $0x148] sm:$0xff]  ;;  %v45_v0 = vld [vmem:[%s1663_s0 + $0xd8] sm:$0xff]  ;;  %v76_v1 = vld [vmem:[%s1663_s0 + $0x1d0] sm:$0xff]  ;;  %v1124_v3 = vpack.c.bf16 %v27_v60, %v26_v59  ;;  %vm727_vm7 = vcmask 244736  }
  0x1d   :  { %v77_v2 = vld [vmem:[%s1663_s0 + $0x1d8] sm:$0xff]  ;;  %v1172_v5 = vpack.c.bf16 %v59_v62, %v58_v61  ;;  %v1127_v6 = vpack.c.bf16 %v45_v0, %v44_v63  ;;  %v28_v8 = vld [vmem:[%s1663_s0 + $0x50] sm:$0xff]  ;;  %v46_v12 = vld [vmem:[%s1663_s0 + $0xe0] sm:$0xff] }
  0x1e   :  { %92 = vperm.xlu0 %1228, %v1450_v58   ;;  %1120 = vmatpush3.bf16.xpose.msk.msra.mxu0 %vm1300_vm1, %v1118_v54  ;;  %v1175_v7 = vpack.c.bf16 %v77_v2, %v76_v1  ;;  %v29_v9 = vld [vmem:[%s1663_s0 + $0x58] sm:$0xff]  ;;  %v60_v10 = vld [vmem:[%s1663_s0 + $0x150] sm:$0xff]  ;;  %v47_v13 = vld [vmem:[%s1663_s0 + $0xe8] sm:$0xff] }
  0x1f   :  { %1168 = vmatpush3.bf16.xpose.msk.msra.mxu1 %vm1300_vm1, %v1166_v55  ;;  %1123 = vmatprep.subr.msk.bf16.mxu0 %vm1300_vm1, %v1121_v56  ;;  %v61_v11 = vld [vmem:[%s1663_s0 + $0x158] sm:$0xff]  ;;  %v78_v14 = vld [vmem:[%s1663_s0 + $0x1e0] sm:$0xff]  ;;  %v79_v15 = vld [vmem:[%s1663_s0 + $0x1e8] sm:$0xff]  ;;  %v1130_v16 = vpack.c.bf16 %v29_v9, %v28_v8  ;;  %v1133_v18 = vpack.c.bf16 %v47_v13, %v46_v12 }
  0x20   :  { %1171 = vmatprep.subr.msk.bf16.mxu1 %vm1300_vm1, %v1169_v57  ;;  %v1178_v17 = vpack.c.bf16 %v61_v11, %v60_v10  ;;  %v1181_v19 = vpack.c.bf16 %v79_v15, %v78_v14  ;;  %v30_v20 = vld [vmem:[%s1663_s0 + $0x60] sm:$0xff]  ;;  %v31_v21 = vld [vmem:[%s1663_s0 + $0x68] sm:$0xff]  ;;  %v48_v24 = vld [vmem:[%s1663_s0 + $0xf0] sm:$0xff]  ;;  %1230 = vset.pattern.permute.xlu1 %v1259_v40 }
  0x21   :  { %v62_v22 = vld [vmem:[%s1663_s0 + $0x160] sm:$0xff]  ;;  %v63_v23 = vld [vmem:[%s1663_s0 + $0x168] sm:$0xff]  ;;  %v49_v25 = vld [vmem:[%s1663_s0 + $0xf8] sm:$0xff]  ;;  %v1136_v28 = vpack.c.bf16 %v31_v21, %v30_v20 }
  0x22   :  { %v80_v26 = vld [vmem:[%s1663_s0 + $0x1f0] sm:$0xff]  ;;  %v81_v27 = vld [vmem:[%s1663_s0 + $0x1f8] sm:$0xff]  ;;  %v1184_v29 = vpack.c.bf16 %v63_v23, %v62_v22  ;;  %v1139_v30 = vpack.c.bf16 %v49_v25, %v48_v24  ;;  %v1598_v38 = vld [vmem:[%s1665_s2] sm:$0xff]  ;;  %1231 = vset.pattern.permute.xlu0 %v1259_v40  ;;  %v1260_v24 = vmov 30  }
  0x23   :  { %v1187_v31 = vpack.c.bf16 %v81_v27, %v80_v26  ;;  %v32_v32 = vld [vmem:[%s1663_s0 + $0x70] sm:$0xff]  ;;  %v33_v33 = vld [vmem:[%s1663_s0 + $0x78] sm:$0xff]  ;;  %v1603_v39 = vld [vmem:[%s1665_s2 + $0x8] sm:$0xff]  ;;  %483 = vperm.xlu1 %1230, %v1598_v38  }
  0x24   :  { %v64_v34 = vld [vmem:[%s1663_s0 + $0x170] sm:$0xff]  ;;  %v65_v35 = vld [vmem:[%s1663_s0 + $0x178] sm:$0xff]  ;;  %v1142_v36 = vpack.c.bf16 %v33_v33, %v32_v32  ;;  %488 = vperm.xlu0 %1231, %v1603_v39   ;;  %v1646_v23 = vld [vmem:[%s1666_s3] sm:$0x1]  ;;  %s1263_s3 = smov [#allocation2]  }
  0x25   :  { %v1190_v37 = vpack.c.bf16 %v65_v35, %v64_v34  ;;  %v1610_v41 = vld [vmem:[%s1665_s2 + $0x10] sm:$0xff]  ;;  %v1616_v42 = vld [vmem:[%s1665_s2 + $0x18] sm:$0x3f]  ;;  %vm1206_vm6 = vmpackc.low %vm730_vm4, %vm1261_vm5  ;;  %s925_s24 = sshll.u32 %s1263_s3, 4  ;;  %s926_s24 = int_to_ptr.vmem [resolvable:$true] %s925_s24 }
  0x26   :  { %1126 = vmatpush3.bf16.xpose.msk.msra.mxu0 %vm1300_vm1, %v1124_v3  ;;  %s1233_s25 = scalar_lea.vmem %s926_s24, 64  ;;  %p1238_p1 = scmp.lt.s32.totalorder %s926_s24, %s926_s24 }
  0x27   :  { %1174 = vmatpush3.bf16.xpose.msk.msra.mxu1 %vm1300_vm1, %v1172_v5  ;;  %1129 = vmatprep.subr.msk.bf16.mxu0 %vm1300_vm1, %v1127_v6  ;;  %p1234_p0 = scmp.ne.s32.totalorder %s926_s24, %s1233_s25  ;;  %p1239_p2 = scmp.lt.s32.totalorder %s1233_s25, %s1233_s25 }
  0x28   :  { %1177 = vmatprep.subr.msk.bf16.mxu1 %vm1300_vm1, %v1175_v7  ;;  %493 = vperm.xlu1 %1230, %v1610_v41  }
  0x29   :  { %1232 = vset.pattern.permute.xlu0 %v1260_v24  ;;  %p1240_p3 = por %p1239_p2, %p1238_p1 }
  0x2a   :  { %720 = vperm.xlu0 %1232, %v1646_v23  }
  0x2b   :  { %p1241_p4 = pnand %p1240_p3, %p1234_p0 }
  0x2c   :  { %498 = vperm.xlu1 %1230, %v1616_v42  }
  0x2e   :  { %1132 = vmatpush3.bf16.xpose.msk.msra.mxu0 %vm1300_vm1, %v1130_v16 }
  0x2f   :  { %1180 = vmatpush3.bf16.xpose.msk.msra.mxu1 %vm1300_vm1, %v1178_v17  ;;  %1135 = vmatprep.subr.msk.bf16.mxu0 %vm1300_vm1, %v1133_v18 }
  0x30   :  { %1183 = vmatprep.subr.msk.bf16.mxu1 %vm1300_vm1, %v1181_v19 }
  0x36   :  { %1138 = vmatpush3.bf16.xpose.msk.msra.mxu0 %vm1300_vm1, %v1136_v28 }
  0x37   :  { %1186 = vmatpush3.bf16.xpose.msk.msra.mxu1 %vm1300_vm1, %v1184_v29  ;;  %1141 = vmatprep.subr.msk.bf16.mxu0 %vm1300_vm1, %v1139_v30 }
  0x38   :  { %1189 = vmatprep.subr.msk.bf16.mxu1 %vm1300_vm1, %v1187_v31 }
  0x3e   :  { %1144 = vmatpush3.bf16.xpose.msk.msra.mxu0 %vm1300_vm1, %v1142_v36 }
  0x3f   :  { %1192 = vmatpush3.bf16.xpose.msk.msra.mxu1 %vm1300_vm1, %v1190_v37 }
  0x45   :  { %1054 = vmatmul.mubr.msk.f32.vlgmr.msra.gmra.mrb[0].mxu0 %vm100_vm0, %v1418_v48 }
  0x46   :  { %1092 = vmatmul.mubr.msk.f32.vlgmr.msra.gmra.mrb[0].mxu1 %vm100_vm0, %v1418_v48  ;;  %1055 = vmatprep.mubr.msk.f32.mxu0 %vm100_vm0, %v1450_v58 }
  0x47   :  { %1093 = vmatprep.mubr.msk.f32.mxu1 %vm100_vm0, %v1450_v58 }
  0x49   :  { %1056 = vmatmul.mubr.msk.f32.gmra.mrb[2].mxu0 %vm100_vm0, %v1450_v58 }
  0x4a   :  { %1094 = vmatmul.mubr.msk.f32.gmra.mrb[2].mxu1 %vm100_vm0, %v1450_v58  ;;  %1057 = vmatprep.mubr.msk.f32.mxu0 %vm100_vm0, %v1443_v53 }
  0x4b   :  { %1095 = vmatprep.mubr.msk.f32.mxu1 %vm100_vm0, %v1443_v53 }
  0x4d   :  { %1058 = vmatmul.mubr.msk.f32.gmra.mrb[4].mxu0 %vm100_vm0, %v1443_v53 }
  0x4e   :  { %1096 = vmatmul.mubr.msk.f32.gmra.mrb[4].mxu1 %vm100_vm0, %v1443_v53  ;;  %587 = vmatprep.mubr.f32.mxu0 %v1258_v4 }
  0x4f   :  { %676 = vmatprep.mubr.f32.mxu1 %v1258_v4 }
  0x99   :  { %v88_v43 = vpop.permute.xlu0 %87 }
  0x9a   :  { %v98_v1 = vpop.permute.xlu1 %97 }
  0x9d   :  { %v93_v50 = vpop.permute.xlu0 %92 }
  0xa2   :  { %v484_v25 = vpop.permute.xlu1 %483 }
  0xa3   :  { %v489_v30 = vpop.permute.xlu0 %488 }
  0xa7   :  { %v494_v33 = vpop.permute.xlu1 %493 }
 0x118   :  { %v365_v44 = vpop.f32.mrb[0].mxu0 }
 0x119   :  { %v448_v45 = vpop.f32.mrb[0].mxu1  ;;  %v367_v46 = vpop.f32.mrb[1].mxu0  ;;  %v366_v48 = vadd.f32 %v365_v44, %v88_v43 }
 0x11a   :  { %v450_v47 = vpop.f32.mrb[1].mxu1  ;;  %v449_v49 = vadd.f32 %v448_v45, %v88_v43  ;;  %v368_v51 = vadd.f32 %v367_v46, %v88_v43 }
 0x11b   :  { %v451_v52 = vadd.f32 %v450_v47, %v88_v43  ;;  %v465_v61 = vmax.f32 %v366_v48, 0.0 }
 0x11c   :  { %v371_v53 = vpop.f32.mrb[2].mxu0  ;;  %v467_v62 = vmax.f32 %v449_v49, 0.0  ;;  %v466_v2 = vmax.f32 %v368_v51, 0.0 }
 0x11d   :  { %v454_v54 = vpop.f32.mrb[2].mxu1  ;;  %v372_v55 = vadd.f32 %v371_v53, %v93_v50  ;;  %v373_v57 = vpop.f32.mrb[3].mxu0  ;;  %v468_v3 = vmax.f32 %v451_v52, 0.0 }
 0x11e   :  { %v455_v56 = vadd.f32 %v454_v54, %v93_v50  ;;  %v456_v58 = vpop.f32.mrb[3].mxu1  ;;  %v374_v59 = vadd.f32 %v373_v57, %v93_v50 }
 0x11f   :  { %v457_v60 = vadd.f32 %v456_v58, %v93_v50  ;;  %v469_v63 = vmax.f32 %v372_v55, 0.0 }
 0x120   :  { %v471_v0 = vmax.f32 %v455_v56, 0.0  ;;  %v470_v5 = vmax.f32 %v374_v59, 0.0  ;;  %v377_v7 = vpop.f32.mrb[4].mxu0  ;;  %v499_v59 = vpop.permute.xlu1 %498 }
 0x121   :  { %v472_v6 = vmax.f32 %v457_v60, 0.0  ;;  %v460_v8 = vpop.f32.mrb[4].mxu1  ;;  %v1195_v9 = vpack.c.bf16 %v469_v63, %v465_v61  ;;  %v379_v11 = vpop.f32.mrb[5].mxu0  ;;  %v378_v17 = vadd.f32 %v377_v7, %v98_v1 }
 0x122   :  { %v1199_v10 = vpack.c.bf16 %v471_v0, %v467_v62  ;;  %v462_v12 = vpop.f32.mrb[5].mxu1  ;;  %v1193_v13 = vpack.c.bf16 %v470_v5, %v466_v2  ;;  %v380_v15 = vadd.f32 %v379_v11, %v98_v1  ;;  %v461_v18 = vadd.f32 %v460_v8, %v98_v1 }
 0x123   :  { %v1197_v14 = vpack.c.bf16 %v472_v6, %v468_v3  ;;  %v463_v16 = vadd.f32 %v462_v12, %v98_v1  ;;  %v473_v21 = vmax.f32 %v378_v17, 0.0 }
 0x124   :  { %v474_v19 = vmax.f32 %v380_v15, 0.0  ;;  %1194 = vmatprep.subr.bf16.mxu0 %v1193_v13  ;;  %v475_v22 = vmax.f32 %v461_v18, 0.0 }
 0x125   :  { %v476_v20 = vmax.f32 %v463_v16, 0.0  ;;  %1198 = vmatprep.subr.bf16.mxu1 %v1197_v14  ;;  %1196 = vmatpush1.bf16.msra.mxu0 %v1195_v9 }
 0x126   :  { %1200 = vmatpush1.bf16.msra.mxu1 %v1199_v10  ;;  %1003 = vmatprep.subr.msk.mxu0 %vm510_vm2, %v474_v19 }
 0x127   :  { %1009 = vmatprep.subr.msk.mxu1 %vm510_vm2, %v476_v20 }
 0x129   :  { %1004 = vmatpush1.msk.msra.mxu0 %vm510_vm2, %v473_v21  ;;  %v723_v21 = vlaneseq }
 0x12a   :  { %1010 = vmatpush1.msk.msra.mxu1 %vm510_vm2, %v475_v22  ;;  %1005 = vmatmul.mubr.msk.f32.vlgmr.msra.gmra.mrb[6].mxu0 %vm501_vm3, %v1598_v38 }
 0x12b   :  { %1011 = vmatmul.mubr.msk.f32.vlgmr.msra.gmra.mrb[6].mxu1 %vm501_vm3, %v1598_v38  ;;  %593 = vmatprep.mubr.f32.mxu0 %v1258_v4  ;;  %v724_v22 = vshrl.u32 %v723_v21, 7  ;;  %vm916_vm8 = vcmp.lt.s32.totalorder %v723_v21, 512 }
 0x12c   :  { %682 = vmatprep.mubr.f32.mxu1 %v1258_v4 }
 0x12d   :  { %v725_v24 = vsub.s32 0, %v724_v22 }
 0x12e   :  { %1006 = vmatmul.mubr.msk.f32.gmra.mrb[8].mxu0 %vm501_vm3, %v1603_v39 }
 0x12f   :  { %1012 = vmatmul.mubr.msk.f32.gmra.mrb[8].mxu1 %vm501_vm3, %v1603_v39  ;;  %599 = vmatprep.mubr.f32.mxu0 %v1258_v4 }
 0x130   :  { %688 = vmatprep.mubr.f32.mxu1 %v1258_v4 }
 0x132   :  { %1007 = vmatmul.mubr.msk.f32.gmra.mrb[10].mxu0 %vm501_vm3, %v1610_v41 }
 0x133   :  { %1013 = vmatmul.mubr.msk.f32.gmra.mrb[10].mxu1 %vm501_vm3, %v1610_v41  ;;  %605 = vmatprep.mubr.f32.mxu0 %v1258_v4 }
 0x134   :  { %694 = vmatprep.mubr.f32.mxu1 %v1258_v4 }
 0x136   :  { %1008 = vmatmul.mubr.msk.f32.gmra.mrb[12].mxu0 %vm501_vm3, %v1616_v42 }
 0x137   :  { %1014 = vmatmul.mubr.msk.f32.gmra.mrb[12].mxu1 %vm501_vm3, %v1616_v42  ;;  %807 = vmatprep.mubr.f32.mxu0 %v1258_v4 }
 0x138   :  { %878 = vmatprep.mubr.f32.mxu1 %v1258_v4 }
 0x1fd   :  { %v589_v26 = vpop.f32.mrb[6].mxu0 }
 0x1fe   :  { %v678_v27 = vpop.f32.mrb[6].mxu1  ;;  %v591_v28 = vpop.f32.mrb[7].mxu0  ;;  %v590_v31 = vadd.f32 %v589_v26, %v484_v25 }
 0x1ff   :  { %v680_v29 = vpop.f32.mrb[7].mxu1  ;;  %v679_v32 = vadd.f32 %v678_v27, %v484_v25  ;;  %v592_v34 = vadd.f32 %v591_v28, %v484_v25  ;;  %v721_v27 = vpop.permute.xlu0 %720 }
 0x200   :  { %v681_v35 = vadd.f32 %v680_v29, %v484_v25  ;;  %v701_v43 = vmax.f32 %v590_v31, 0.0  ;;  %v1262_v25 = vmov 1966171168   ;;  %v726_v28 = vrot.slane %v721_v27, %v725_v24 }
 0x201   :  { %v595_v36 = vpop.f32.mrb[8].mxu0  ;;  %v703_v44 = vmax.f32 %v679_v32, 0.0  ;;  %v702_v47 = vmax.f32 %v592_v34, 0.0  ;;  %v892_v26 = vunpack.c.l.s4 %v1262_v25 }
 0x202   :  { %v684_v37 = vpop.f32.mrb[8].mxu1  ;;  %v596_v4 = vadd.f32 %v595_v36, %v489_v30  ;;  %v597_v39 = vpop.f32.mrb[9].mxu0  ;;  %v704_v48 = vmax.f32 %v681_v35, 0.0 }
 0x203   :  { %v685_v38 = vadd.f32 %v684_v37, %v489_v30  ;;  %v686_v40 = vpop.f32.mrb[9].mxu1  ;;  %v598_v41 = vadd.f32 %v597_v39, %v489_v30  ;;  %v893_v29 = vunpack.c.0.s8 %v892_v26 }
 0x204   :  { %v687_v42 = vadd.f32 %v686_v40, %v489_v30  ;;  %v705_v45 = vmax.f32 %v596_v4, 0.0 }
 0x205   :  { %v707_v46 = vmax.f32 %v685_v38, 0.0  ;;  %v706_v49 = vmax.f32 %v598_v41, 0.0  ;;  %v601_v51 = vpop.f32.mrb[10].mxu0  ;;  %v896_v36 = vsub.s32 %v893_v29, %v724_v22 }
 0x206   :  { %v708_v50 = vmax.f32 %v687_v42, 0.0  ;;  %v690_v52 = vpop.f32.mrb[10].mxu1  ;;  %v1203_v53 = vpack.c.bf16 %v705_v45, %v701_v43  ;;  %v603_v55 = vpop.f32.mrb[11].mxu0  ;;  %v602_v60 = vadd.f32 %v601_v51, %v494_v33 }
 0x207   :  { %v1213_v54 = vpack.c.bf16 %v707_v46, %v703_v44  ;;  %v692_v56 = vpop.f32.mrb[11].mxu1  ;;  %v1201_v57 = vpack.c.bf16 %v706_v49, %v702_v47  ;;  %v691_v61 = vadd.f32 %v690_v52, %v494_v33  ;;  %v604_v62 = vadd.f32 %v603_v55, %v494_v33 }
 0x208   :  { %v1211_v58 = vpack.c.bf16 %v708_v50, %v704_v48  ;;  %v693_v63 = vadd.f32 %v692_v56, %v494_v33  ;;  %v709_v9 = vmax.f32 %v602_v60, 0.0 }
 0x209   :  { %v607_v0 = vpop.f32.mrb[12].mxu0  ;;  %1202 = vmatprep.subr.bf16.mxu0 %v1201_v57  ;;  %v711_v10 = vmax.f32 %v691_v61, 0.0  ;;  %v710_v13 = vmax.f32 %v604_v62, 0.0 }
 0x20a   :  { %v696_v1 = vpop.f32.mrb[12].mxu1  ;;  %1212 = vmatprep.subr.bf16.mxu1 %v1211_v58  ;;  %v608_v2 = vadd.f32 %v607_v0, %v499_v59  ;;  %v609_v5 = vpop.f32.mrb[13].mxu0  ;;  %1204 = vmatpush1.bf16.msra.mxu0 %v1203_v53  ;;  %v712_v14 = vmax.f32 %v693_v63, 0.0 }
 0x20b   :  { %v697_v3 = vadd.f32 %v696_v1, %v499_v59  ;;  %v698_v6 = vpop.f32.mrb[13].mxu1  ;;  %1214 = vmatpush1.bf16.msra.mxu1 %v1213_v54  ;;  %v610_v7 = vadd.f32 %v609_v5, %v499_v59 }
 0x20c   :  { %v699_v8 = vadd.f32 %v698_v6, %v499_v59  ;;  %v713_v11 = vmax.f32 %v608_v2, 0.0 }
 0x20d   :  { %v715_v12 = vmax.f32 %v697_v3, 0.0  ;;  %v714_v15 = vmax.f32 %v610_v7, 0.0 }
 0x20e   :  { %v716_v16 = vmax.f32 %v699_v8, 0.0  ;;  %v1208_v17 = vpack.c.bf16 %v713_v11, %v709_v9 }
 0x20f   :  { %v1218_v18 = vpack.c.bf16 %v715_v12, %v711_v10  ;;  %v1205_v19 = vpack.c.bf16 %v714_v15, %v710_v13 }
 0x210   :  { %v1215_v20 = vpack.c.bf16 %v716_v16, %v712_v14 }
 0x211   :  { %1207 = vmatprep.subr.msk.bf16.mxu0 %vm1206_vm6, %v1205_v19 }
 0x212   :  { %1217 = vmatprep.subr.msk.bf16.mxu1 %vm1206_vm6, %v1215_v20  ;;  %1210 = vmatpush1.bf16.msk.msra.mxu0 %vm1206_vm6, %v1208_v17 }
 0x213   :  { %1220 = vmatpush1.bf16.msk.msra.mxu1 %vm1206_vm6, %v1218_v18 }
 0x215   :  { %1017 = vmatmul.mubr.msk.f32.vlgmr.msra.gmra.mrb[14].mxu0 %vm727_vm7, %v1646_v23 }
 0x216   :  { %1020 = vmatmul.mubr.msk.f32.vlgmr.msra.gmra.mrb[14].mxu1 %vm727_vm7, %v1646_v23 }
 0x2e8   :  { %v809_v30 = vpop.f32.mrb[14].mxu0 }
 0x2e9   :  { %v880_v31 = vpop.f32.mrb[14].mxu1  ;;  %v810_v32 = vadd.f32 %v809_v30, %v726_v28  ;;  %v811_v34 = vpop.f32.mrb[15].mxu0 }
 0x2ea   :  { %v881_v33 = vadd.f32 %v880_v31, %v726_v28  ;;  %v882_v35 = vpop.f32.mrb[15].mxu1  ;;  %v812_v37 = vadd.f32 %v811_v34, %v726_v28 }
 0x2eb   :  { %v883_v4 = vadd.f32 %v882_v35, %v726_v28 }
 0x2ec   :  { %v889_v38 = vcombine.low %v810_v32, %v812_v37 }
 0x2ed   :  { %v890_v39 = vcombine.low %v881_v33, %v883_v4 }
 0x2ee   :  { %v897_v23 = vrot.slane %v889_v38, %v896_v36 }
 0x2ef   :  { %v904_v40 = vrot.slane %v890_v39, %v896_v36 }
 0x2f1   :  { %v905_v41 = vcombine.low %v897_v23, %v904_v40 }
 0x2f3   :  { %v912_v42 = vrot.slane %v905_v41, %v896_v36 }
 0x2f5   :  { %918 = vst.msk [vmem:[#allocation2] sm:$0xf] %vm916_vm8, %v912_v42 }
 0x2f6   :  { %1244 = shalt.err (!%p1241_p4)
}
 0x2f7   :  { %s1245_s28 = scalar_lea.hbm %s1667_s4, 64 }
 0x2f8   :  { %p1246_p5 = scmp.ne.s32.totalorder %s1667_s4, %s1245_s28  ;;  %p1249_p6 = scmp.lt.u32.totalorder %s1245_s28, %s1667_s4 }
 0x2fa   :  { %p1251_p7 = pnand %p1249_p6, %p1246_p5 }
 0x2fc   :  { %1254 = shalt.err (!%p1251_p7)
}
 0x2fd   :  { %928 = dma.vmem_to_hbm [thread:$0]  %s926_s24, 64, %s1667_s4, [#allocation3]  }
 0x2fe   :  { %1255 = dma.done.wait [#allocation3], 64  }
 0x2ff   :  { %1256 = vsyncadd [#allocation3], 4294967232 }
 0x300   :  { %932 = vsyncpa [#allocation3], 1 }

</bundles_post_ra>
